<compile_context>
chip_gen: v6e
topology: v6e:2x2x1
jax: 0.10.0
libtpu: 0.0.40
codegen_flags: <defaults>
</compile_context>

<pallas_src>
import functools

import jax
import jax.numpy as jnp
from jax import lax
from jax.experimental import pallas as pl
from jax.experimental.pallas import tpu as pltpu

IN_F = 15
HID = 15
OUT_F = 1


def _roundup(a, m):
    return ((a + m - 1) // m) * m


def mlp_kernel(x_ref, w1_ref, b1_ref, w2_ref, b2_ref, w3_ref, b3_ref, o_ref,
               *, num_chunks, chunk, use_bf16):
    cdt = jnp.bfloat16 if use_bf16 else jnp.float32

    # Resident weights (PyTorch-native (out, in) layout), cast once per grid step.
    w1 = w1_ref[...].astype(cdt)   # (15, 15)
    w2 = w2_ref[...].astype(cdt)   # (15, 15)
    w3 = w3_ref[...].astype(cdt)   # (1, 15)

    # Bias broadcasts hoisted out of the chunk loop (no per-iteration broadcast_in_dim).
    b1 = jnp.broadcast_to(b1_ref[...], (HID, chunk))     # (15, chunk)
    b2 = jnp.broadcast_to(b2_ref[...], (HID, chunk))     # (15, chunk)
    b3 = jnp.broadcast_to(b3_ref[...], (OUT_F, chunk))   # (1, chunk)

    # Contract the minor dim of both operands: (out, in) x (rows, in) -> (out, rows).
    # This fuses the x transpose into the first matmul (same structure as q @ k^T).
    dn_t = (((1,), (1,)), ((), ()))

    def body(c, carry):
        row0 = pl.multiple_of(c * chunk, chunk)
        xs = x_ref[pl.ds(row0, chunk), :].astype(cdt)                    # (chunk, 15)
        h1 = jnp.tanh(
            lax.dot_general(w1, xs, dn_t, preferred_element_type=jnp.float32) + b1)
        h2 = jnp.tanh(
            jnp.dot(w2, h1.astype(cdt), preferred_element_type=jnp.float32) + b2)
        y = jnp.dot(w3, h2.astype(cdt), preferred_element_type=jnp.float32) + b3
        o_ref[c] = y                                                     # (1, chunk) lane-dense
        return carry

    lax.fori_loop(0, num_chunks, body, 0)


def nn_forward(x, params, *, tile_b=16384, inner_chunk=256, use_bf16=True):
    """Pallas implementation of NN.forward.  x: (B, 15) float32 -> (B, 1) float32."""
    w1, b1, w2, b2, w3, b3 = params
    B = x.shape[0]
    assert x.shape[1] == IN_F
    chunk = inner_chunk
    assert chunk % 128 == 0 and tile_b % chunk == 0

    x = x.astype(jnp.float32)

    # Tile selection: big tiles amortize per-step overhead, but keep >= 2 grid steps
    # whenever the batch allows it so both v7x TensorCores get work.
    b_ceil = _roundup(max(B, 1), chunk)
    if b_ceil > tile_b:
        tile = tile_b
    elif b_ceil >= 2 * chunk:
        tile = _roundup(pl.cdiv(b_ceil, 2), chunk)
    else:
        tile = chunk
    num_chunks = tile // chunk
    grid0 = pl.cdiv(B, tile)
    n_rows = grid0 * num_chunks   # output rows, one (1, chunk) slab per chunk

    kernel = functools.partial(mlp_kernel, num_chunks=num_chunks, chunk=chunk,
                               use_bf16=use_bf16)
    full = lambda shape: pl.BlockSpec(shape, lambda i: (0, 0))  # resident weights/biases

    out3 = pl.pallas_call(
        kernel,
        out_shape=jax.ShapeDtypeStruct((n_rows, 1, chunk), jnp.float32),
        grid=(grid0,),
        in_specs=[
            pl.BlockSpec((tile, IN_F), lambda i: (i, 0)),  # x rows; ragged edge masked by Pallas
            full((HID, IN_F)),                             # w1 (out, in)
            full((HID, 1)),                                # b1
            full((HID, HID)),                              # w2
            full((HID, 1)),                                # b2
            full((OUT_F, HID)),                            # w3
            full((OUT_F, 1)),                              # b3
        ],
        out_specs=pl.BlockSpec((num_chunks, 1, chunk), lambda i: (i, 0, 0)),
        compiler_params=pltpu.CompilerParams(
            dimension_semantics=("parallel",),
            vmem_limit_bytes=64 * 1024 * 1024,  # ~17 MiB used; above v5e's 16 MiB default
        ),
    )(x, w1, b1, w2, b2, w3, b3)

    # Flatten (n_rows, 1, chunk) -> sample order, drop ragged tail, return (B, 1).
    return out3.reshape(-1)[:B].reshape(B, OUT_F)


def init_params(key):
    """Deterministic init mimicking nn.Linear's U(-1/sqrt(fan_in), 1/sqrt(fan_in)).

    Weights are stored PyTorch-native (out_features, in_features); biases as (out, 1)
    so they broadcast over the lane (batch) axis inside the kernel.
    """
    ks = jax.random.split(key, 6)

    def lin(kw, kb, fan_in, fan_out):
        bound = 1.0 / (fan_in ** 0.5)
        w = jax.random.uniform(kw, (fan_out, fan_in), jnp.float32, -bound, bound)
        b = jax.random.uniform(kb, (fan_out, 1), jnp.float32, -bound, bound)
        return w, b

    w1, b1 = lin(ks[0], ks[1], IN_F, HID)
    w2, b2 = lin(ks[2], ks[3], HID, HID)
    w3, b3 = lin(ks[4], ks[5], HID, OUT_F)
    return (w1, b1, w2, b2, w3, b3)


def nn_forward_ref(x, params):
    w1, b1, w2, b2, w3, b3 = params
    hp = jax.lax.Precision.HIGHEST
    h = jnp.tanh(jnp.dot(x, w1.T, precision=hp) + b1[:, 0])
    h = jnp.tanh(jnp.dot(h, w2.T, precision=hp) + b2[:, 0])
    return jnp.dot(h, w3.T, precision=hp) + b3[:, 0]


if __name__ == "__main__":
    key = jax.random.PRNGKey(0)
    kp, kx = jax.random.split(key)
    params = init_params(kp)

    # Small demo batch; deliberately not a multiple of the 256-row chunk to exercise
    # the ragged-block path (no padding in the wrapper).
    B = 300
    x = jax.random.normal(kx, (B, IN_F), dtype=jnp.float32)

    ref = nn_forward_ref(x, params)

    # Full-precision path (tight tolerance).
    out_f32 = jax.block_until_ready(nn_forward(x, params, use_bf16=False))
    assert out_f32.shape == (B, OUT_F)
    assert jnp.allclose(out_f32, ref, atol=2e-5, rtol=1e-5), \
        float(jnp.max(jnp.abs(out_f32 - ref)))

    # Default bf16-operand path (f32 accumulation); looser tolerance.
    out_bf16 = jax.block_until_ready(nn_forward(x, params, use_bf16=True))
    assert out_bf16.shape == (B, OUT_F)
    assert jnp.allclose(out_bf16, ref, atol=5e-2, rtol=5e-2), \
        float(jnp.max(jnp.abs(out_bf16 - ref)))

    print("KERNEL_OK")
</pallas_src>

<mosaic_0001>
module attributes {stable_mosaic.version = 11 : i64} {
  func.func @mlp_kernel(%arg0: i32, %arg1: memref<256x15xf32, #tpu.memory_space<vmem>>, %arg2: memref<15x15xf32, #tpu.memory_space<vmem>>, %arg3: memref<15x1xf32, #tpu.memory_space<vmem>>, %arg4: memref<15x15xf32, #tpu.memory_space<vmem>>, %arg5: memref<15x1xf32, #tpu.memory_space<vmem>>, %arg6: memref<1x15xf32, #tpu.memory_space<vmem>>, %arg7: memref<1x1xf32, #tpu.memory_space<vmem>>, %arg8: memref<1x1x256xf32, #tpu.memory_space<vmem>>) attributes {dimension_semantics = [#tpu.dimension_semantics<parallel>], iteration_bounds = array<i64: 2>, scalar_prefetch = 0 : i64, scratch_operands = 0 : i64, tpu.core_type = #tpu.core_type<tc>, window_params = [{transform_indices = @transform_0, window_bounds = array<i64: 256, 15>}, {pipeline_mode = #tpu.pipeline_mode<synchronous>, transform_indices = @transform_1, window_bounds = array<i64: 15, 15>}, {pipeline_mode = #tpu.pipeline_mode<synchronous>, transform_indices = @transform_2, window_bounds = array<i64: 15, 1>}, {pipeline_mode = #tpu.pipeline_mode<synchronous>, transform_indices = @transform_3, window_bounds = array<i64: 15, 15>}, {pipeline_mode = #tpu.pipeline_mode<synchronous>, transform_indices = @transform_4, window_bounds = array<i64: 15, 1>}, {pipeline_mode = #tpu.pipeline_mode<synchronous>, transform_indices = @transform_5, window_bounds = array<i64: 1, 15>}, {pipeline_mode = #tpu.pipeline_mode<synchronous>, transform_indices = @transform_6, window_bounds = array<i64: 1, 1>}, {transform_indices = @transform_7, window_bounds = array<i64: 1, 1, 256>}]} {
    %c0 = arith.constant 0 : index
    %c0_0 = arith.constant 0 : index
    %0 = vector.load %arg2[%c0, %c0_0] : memref<15x15xf32, #tpu.memory_space<vmem>>, vector<15x15xf32>
    %c0_1 = arith.constant 0 : index
    %c0_2 = arith.constant 0 : index
    %1 = vector.load %arg4[%c0_1, %c0_2] : memref<15x15xf32, #tpu.memory_space<vmem>>, vector<15x15xf32>
    %c0_3 = arith.constant 0 : index
    %c0_4 = arith.constant 0 : index
    %2 = vector.load %arg6[%c0_3, %c0_4] : memref<1x15xf32, #tpu.memory_space<vmem>>, vector<1x15xf32>
    %c0_5 = arith.constant 0 : index
    %c0_6 = arith.constant 0 : index
    %3 = vector.load %arg3[%c0_5, %c0_6] : memref<15x1xf32, #tpu.memory_space<vmem>>, vector<15x1xf32>
    %4 = vector.shape_cast %3 : vector<15x1xf32> to vector<15x1xf32>
    %5 = vector.broadcast %4 : vector<15x1xf32> to vector<15x256xf32>
    %c0_7 = arith.constant 0 : index
    %c0_8 = arith.constant 0 : index
    %6 = vector.load %arg5[%c0_7, %c0_8] : memref<15x1xf32, #tpu.memory_space<vmem>>, vector<15x1xf32>
    %7 = vector.shape_cast %6 : vector<15x1xf32> to vector<15x1xf32>
    %8 = vector.broadcast %7 : vector<15x1xf32> to vector<15x256xf32>
    %c0_9 = arith.constant 0 : index
    %c0_10 = arith.constant 0 : index
    %9 = vector.load %arg7[%c0_9, %c0_10] : memref<1x1xf32, #tpu.memory_space<vmem>>, vector<1x1xf32>
    %10 = vector.shape_cast %9 : vector<1x1xf32> to vector<1x1xf32>
    %11 = vector.broadcast %10 : vector<1x1xf32> to vector<1x256xf32>
    %c0_i32 = arith.constant 0 : i32
    %c256_i32 = arith.constant 256 : i32
    %12 = arith.muli %c0_i32, %c256_i32 : i32
    %13 = tpu.assume_multiple %12, 256 : i32
    %14 = arith.index_cast %13 : i32 to index
    %c0_11 = arith.constant 0 : index
    %15 = vector.load %arg1[%14, %c0_11] : memref<256x15xf32, #tpu.memory_space<vmem>>, vector<256x15xf32>
    %cst = arith.constant dense<0.000000e+00> : vector<15x256xf32>
    %16 = tpu.matmul %0, %15, %cst {dimension_numbers = #tpu.dot_dimension_numbers<[1], [1], [0], [0], [0, 0, 1, 0], [], []>} : vector<15x15xf32>, vector<256x15xf32>, vector<15x256xf32> -> vector<15x256xf32>
    %17 = arith.addf %16, %5 : vector<15x256xf32>
    %18 = math.tanh %17 : vector<15x256xf32>
    %cst_12 = arith.constant dense<0.000000e+00> : vector<15x256xf32>
    %19 = tpu.matmul %1, %18, %cst_12 {dimension_numbers = #tpu.dot_dimension_numbers<[1], [0], [0], [1], [0, 0, 1, 1], [], []>} : vector<15x15xf32>, vector<15x256xf32>, vector<15x256xf32> -> vector<15x256xf32>
    %20 = arith.addf %19, %8 : vector<15x256xf32>
    %21 = math.tanh %20 : vector<15x256xf32>
    %cst_13 = arith.constant dense<0.000000e+00> : vector<1x256xf32>
    %22 = tpu.matmul %2, %21, %cst_13 {dimension_numbers = #tpu.dot_dimension_numbers<[1], [0], [0], [1], [0, 0, 1, 1], [], []>} : vector<1x15xf32>, vector<15x256xf32>, vector<1x256xf32> -> vector<1x256xf32>
    %23 = arith.addf %22, %11 : vector<1x256xf32>
    %24 = arith.index_cast %c0_i32 : i32 to index
    %c0_14 = arith.constant 0 : index
    %c0_15 = arith.constant 0 : index
    %25 = vector.load %arg8[%24, %c0_14, %c0_15] : memref<1x1x256xf32, #tpu.memory_space<vmem>>, vector<1x1x256xf32>
    %26 = vector.shape_cast %25 : vector<1x1x256xf32> to vector<1x256xf32>
    %27 = vector.shape_cast %23 : vector<1x256xf32> to vector<1x1x256xf32>
    tpu.vector_store %arg8[%24, %c0_14, %c0_15], %27 {strides = array<i32>} : memref<1x1x256xf32, #tpu.memory_space<vmem>>, vector<1x1x256xf32>,
    %c1_i32 = arith.constant 1 : i32
    return
  }
  func.func @transform_0(%arg0: i32) -> (i32, i32) {
    %c0_i32 = arith.constant 0 : i32
    %c0_i32_0 = arith.constant 0 : i32
    return %arg0, %c0_i32 : i32, i32
  }
  func.func @transform_1(%arg0: i32) -> (i32, i32) {
    %c0_i32 = arith.constant 0 : i32
    %c0_i32_0 = arith.constant 0 : i32
    %c0_i32_1 = arith.constant 0 : i32
    return %c0_i32, %c0_i32_0 : i32, i32
  }
  func.func @transform_2(%arg0: i32) -> (i32, i32) {
    %c0_i32 = arith.constant 0 : i32
    %c0_i32_0 = arith.constant 0 : i32
    %c0_i32_1 = arith.constant 0 : i32
    return %c0_i32, %c0_i32_0 : i32, i32
  }
  func.func @transform_3(%arg0: i32) -> (i32, i32) {
    %c0_i32 = arith.constant 0 : i32
    %c0_i32_0 = arith.constant 0 : i32
    %c0_i32_1 = arith.constant 0 : i32
    return %c0_i32, %c0_i32_0 : i32, i32
  }
  func.func @transform_4(%arg0: i32) -> (i32, i32) {
    %c0_i32 = arith.constant 0 : i32
    %c0_i32_0 = arith.constant 0 : i32
    %c0_i32_1 = arith.constant 0 : i32
    return %c0_i32, %c0_i32_0 : i32, i32
  }
  func.func @transform_5(%arg0: i32) -> (i32, i32) {
    %c0_i32 = arith.constant 0 : i32
    %c0_i32_0 = arith.constant 0 : i32
    %c0_i32_1 = arith.constant 0 : i32
    return %c0_i32, %c0_i32_0 : i32, i32
  }
  func.func @transform_6(%arg0: i32) -> (i32, i32) {
    %c0_i32 = arith.constant 0 : i32
    %c0_i32_0 = arith.constant 0 : i32
    %c0_i32_1 = arith.constant 0 : i32
    return %c0_i32, %c0_i32_0 : i32, i32
  }
  func.func @transform_7(%arg0: i32) -> (i32, i32, i32) {
    %c0_i32 = arith.constant 0 : i32
    %c0_i32_0 = arith.constant 0 : i32
    %c0_i32_1 = arith.constant 0 : i32
    return %arg0, %c0_i32, %c0_i32_0 : i32, i32, i32
  }
}

</mosaic_0001>

<bundles_post_ra>
// kernel: tpu_custom_call.1
= control target key start
LH: loop header
LB: loop body
LE: loop exit
PB: predicated region body
PF: predicated region fallthrough
CT: control target
= control target key end

     0   :  { %s1280_s0 = inlined_call_operand.vmem [shape: f32[300,15], index: 0, kind: input, shape index: {}]   ;;  %s1281_s1 = inlined_call_operand.vmem [shape: f32[15,15], index: 1, kind: input, shape index: {}]   ;;  %s1282_s2 = inlined_call_operand.vmem [shape: f32[15,1], index: 2, kind: input, shape index: {}]   ;;  %s1283_s3 = inlined_call_operand.vmem [shape: f32[15,15], index: 3, kind: input, shape index: {}]   ;;  %s1284_s4 = inlined_call_operand.vmem [shape: f32[15,1], index: 4, kind: input, shape index: {}]   ;;  %s1285_s5 = inlined_call_operand.vmem [shape: f32[1,15], index: 5, kind: input, shape index: {}]   ;;  %s1286_s6 = inlined_call_operand.<no memory space> [shape: f32[1,1], index: 6, kind: input, shape index: {}]   ;;  %s1287_s7 = inlined_call_operand.hbm [shape: f32[2,1,256], index: 7, kind: output, shape index: {}]  }
   0x1   :  { %v12_v0 = vstv %s1286_s6 }
   0x2   :  { %13 = vst [vmem:[#allocation2] sm:$0x1] %v12_v0 }
   0x3   :  { %14 = vsyncpa [#allocation4], 0 }
   0x4   :  { %16 = vsyncpa [#allocation4 + $0x1], 0  ;;  %s1086_s26 = smov 0   ;;  %s1088_s27 = smov 0  }
   0x5   :  { %s1090_s28 = smov 0   ;;  %s1092_s29 = smov 0  }
   0x6 LB: > { %s826_s6 = sadd.s32 4294967295, %s1037_s29   ;;  %s827_s30 = sadd.s32 4294967294, %s1037_s29   ;;  %s1037_s29 = sphi %s1092_s29, %s1293_s29   ;;  %s1033_s28 = sphi %s1090_s28, %s1292_s28   ;;  %s1029_s27 = sphi %s1088_s27, %s1291_s27   ;;  %s1025_s26 = sphi %s1086_s26, %s1290_s26  }
   0x7   : > { %s1109_s8 = sadd.s32 1, %s1037_s29   ;;  %s181_s9 = sadd.s32 1, %s1033_s28 }
   0x8   : > { %s178_s10 = ssub.s32 %s1037_s29, %s1109_s8  ;;  %p191_p0 = scmp.ne.s32.totalorder %s1033_s28, %s1029_s27 }
   0x9   : > { %p179_p1 = scmp.eq.s32.totalorder %s178_s10, 0  ;;  %p192_p2 = scmp.eq.s32.totalorder %s826_s6, 1 }
   0xa   : > { %p197_p3 = scmp.ne.s32.totalorder %s1029_s27, %s1025_s26  ;;  %p198_p4 = scmp.eq.s32.totalorder %s827_s30, 1 }
   0xb   : > { %s1119_s11 = scalar_select %p179_p1, %s1033_s28, %s181_s9  }
   0xc   : > { %p1121_p5 = por %p192_p2, %p191_p0  ;;  %p1125_p6 = por %p198_p4, %p197_p3 }
   0xd   : > { %p830_p7 = scmp.ge.s32.totalorder %s1037_s29, 1  ;;  %p251_p8 = scmp.lt.s32.totalorder %s1037_s29, 3 }
   0xf   : > { %p252_p9 = pnand %p830_p7, %p251_p8 }
  0x10   : > { %s1131_s14 = sshll.u32 (!%p252_p9), %s826_s6, 5  ;;  %s284_s23 = sand.u32 (!%p252_p9), 1, %s1029_s27  }
  0x11   : > { %255 = sbr.rel (%p252_p9) target bundleno = 745 (0x2e9), region = 48  ;;  %p292_p10 = scmp.lt.s32.totalorder (!%p252_p9), %s1131_s14, 37 }
  0x12   : > { %s831_s24 = sshll.u32 (!%p252_p9), %s284_s23, 1  ;;  %s766_s10 = scalar_lea.hbm (!%p252_p9), %s1287_s7, %s1131_s14 }
  0x13   : > { %s754_s15 = scalar_lea.sflag (!%p252_p9), [#allocation4], %s284_s23  ;;  %s1042_s17 = smov (!%p252_p9), [#allocation3]  }
  0x14   : > { %s981_s18 = sshll.u32 (!%p252_p9), %s1042_s17, 4  ;;  %s982_s18 = int_to_ptr.vmem [resolvable:$false] %s981_s18 }
  0x16   : > { %vm372_vm0 = vcmask 121856   ;;  %v1136_v1 = vld [vmem:[%s1281_s1] sm:$0xff]  ;;  %v1039_v2 = vmov 0   ;;  %v307_v3 = vld [vmem:[%s1282_s2 + $0x8] sm:$0x7f]  ;;  %s293_s19 = scalar_select %p292_p10, %s1131_s14, 37 }
  0x17   : > { %913 = vmatprep.mubr.msk.f32.mxu0 %vm372_vm0, %v1136_v1  ;;  %959 = vset.pattern.permute.xlu0 %v1039_v2  ;;  %v306_v4 = vld [vmem:[%s1282_s2] sm:$0xff]  ;;  %v302_v38 = vld [vmem:[%s1281_s1 + $0x8] sm:$0x7f]  ;;  %v1040_v39 = vmov 0.0   ;;  %vm562_vm1 = vcmask 1046528  }
  0x18   : > { %315 = vperm.xlu0 %959, %v307_v3   ;;  %960 = vset.pattern.permute.xlu1 %v1039_v2  ;;  %s833_s22 = sshll.u32 %s293_s19, 3  ;;  %v330_v5 = vld [vmem:[#allocation2] sm:$0x1]  ;;  %v319_v40 = vld [vmem:[%s1284_s4 + $0x8] sm:$0x7f]  ;;  %s983_s19 = scalar_lea.vmem %s982_s18, 64 }
  0x19   : > { %s1151_s25 = scalar_lea.vmem %s1280_s0, %s833_s22  ;;  %633 = vmatprep.mubr.f32.mxu1 %v1040_v39  ;;  %327 = vperm.xlu1 %960, %v319_v40   ;;  %v318_v41 = vld [vmem:[%s1284_s4] sm:$0xff]  ;;  %v304_v57 = vld [vmem:[%s1283_s3 + $0x8] sm:$0x7f] }
  0x1a   : > { %v371_v6 = vld [vmem:[%s1151_s25 + $0xf8] sm:$0xff]  ;;  %v370_v8 = vld [vmem:[%s1151_s25 + $0xf0] sm:$0xff]  ;;  %v369_v10 = vld [vmem:[%s1151_s25 + $0xe8] sm:$0xff] }
  0x1b   : > { %v355_v7 = vld [vmem:[%s1151_s25 + $0x78] sm:$0xff]  ;;  %881 = vmatprep.subr.msk.mxu0 %vm372_vm0, %v371_v6  ;;  %v354_v9 = vld [vmem:[%s1151_s25 + $0x70] sm:$0xff]  ;;  %v353_v11 = vld [vmem:[%s1151_s25 + $0x68] sm:$0xff] }
  0x1c   : > { %310 = vperm.xlu0 %959, %v306_v4   ;;  %882 = vmatpush3.xpose.msk.msra.mxu0 %vm372_vm0, %v355_v7  ;;  %v368_v12 = vld [vmem:[%s1151_s25 + $0xe0] sm:$0xff]  ;;  %v367_v14 = vld [vmem:[%s1151_s25 + $0xd8] sm:$0xff]  ;;  %v366_v16 = vld [vmem:[%s1151_s25 + $0xd0] sm:$0xff] }
  0x1d   : > { %883 = vmatprep.subr.msk.mxu0 %vm372_vm0, %v370_v8  ;;  %v352_v13 = vld [vmem:[%s1151_s25 + $0x60] sm:$0xff]  ;;  %v351_v15 = vld [vmem:[%s1151_s25 + $0x58] sm:$0xff]  ;;  %v350_v17 = vld [vmem:[%s1151_s25 + $0x50] sm:$0xff]  ;;  %322 = vperm.xlu1 %960, %v318_v41  }
  0x1e   : > { %v365_v18 = vld [vmem:[%s1151_s25 + $0xc8] sm:$0xff]  ;;  %v364_v20 = vld [vmem:[%s1151_s25 + $0xc0] sm:$0xff]  ;;  %v363_v22 = vld [vmem:[%s1151_s25 + $0xb8] sm:$0xff] }
  0x1f   : > { %v349_v19 = vld [vmem:[%s1151_s25 + $0x48] sm:$0xff]  ;;  %v348_v21 = vld [vmem:[%s1151_s25 + $0x40] sm:$0xff]  ;;  %v347_v23 = vld [vmem:[%s1151_s25 + $0x38] sm:$0xff] }
  0x20   : > { %333 = vperm.xlu0 %959, %v330_v5   ;;  %884 = vmatpush3.xpose.msk.msra.mxu0 %vm372_vm0, %v354_v9  ;;  %v362_v24 = vld [vmem:[%s1151_s25 + $0xb0] sm:$0xff]  ;;  %v361_v26 = vld [vmem:[%s1151_s25 + $0xa8] sm:$0xff]  ;;  %v360_v28 = vld [vmem:[%s1151_s25 + $0xa0] sm:$0xff]  ;;  %v336_v9 = vlaneseq }
  0x21   : > { %885 = vmatprep.subr.msk.mxu0 %vm372_vm0, %v369_v10  ;;  %v346_v25 = vld [vmem:[%s1151_s25 + $0x30] sm:$0xff]  ;;  %v345_v27 = vld [vmem:[%s1151_s25 + $0x28] sm:$0xff]  ;;  %v344_v29 = vld [vmem:[%s1151_s25 + $0x20] sm:$0xff] }
  0x22   : > { %v359_v30 = vld [vmem:[%s1151_s25 + $0x98] sm:$0xff]  ;;  %v358_v32 = vld [vmem:[%s1151_s25 + $0x90] sm:$0xff]  ;;  %v357_v34 = vld [vmem:[%s1151_s25 + $0x88] sm:$0xff]  ;;  %v337_v10 = vshrl.u32 %v336_v9, 7  ;;  %vm750_vm2 = vcmp.lt.s32.totalorder %v336_v9, 256 }
  0x23   : > { %v343_v31 = vld [vmem:[%s1151_s25 + $0x18] sm:$0xff]  ;;  %v342_v33 = vld [vmem:[%s1151_s25 + $0x10] sm:$0xff]  ;;  %v341_v35 = vld [vmem:[%s1151_s25 + $0x8] sm:$0xff] }
  0x24   : > { %886 = vmatpush3.xpose.msk.msra.mxu0 %vm372_vm0, %v353_v11  ;;  %v356_v36 = vld [vmem:[%s1151_s25 + $0x80] sm:$0xff]  ;;  %v1041_v11 = vmov 1966171168  }
  0x25   : > { %887 = vmatprep.subr.msk.mxu0 %vm372_vm0, %v368_v12  ;;  %v340_v37 = vld [vmem:[%s1151_s25] sm:$0xff]  ;;  %v734_v12 = vunpack.c.l.s4 %v1041_v11  ;;  %s286_s25 = scalar_lea.vmem [#allocation3], %s831_s24 }
  0x26   : > { %v303_v55 = vld [vmem:[%s1283_s3] sm:$0xff]  ;;  %s768_s6 = sshll.u32 %s286_s25, 4  ;;  %s769_s6 = int_to_ptr.vmem [resolvable:$true] %s768_s6 }
  0x27   : > { %v305_v7 = vld [vmem:[%s1285_s5] sm:$0x1]  ;;  %s977_s16 = scalar_lea.vmem %s769_s6, 32  ;;  %p984_p0 = scmp.lt.s32.totalorder %s769_s6, %s982_s18 }
  0x28   : > { %888 = vmatpush3.xpose.msk.msra.mxu0 %vm372_vm0, %v352_v13  ;;  %v338_v13 = vsub.s32 0, %v337_v10  ;;  %p978_p11 = scmp.ne.s32.totalorder %s769_s6, %s977_s16  ;;  %p985_p1 = scmp.lt.s32.totalorder %s983_s19, %s977_s16 }
  0x29   : > { %889 = vmatprep.subr.msk.mxu0 %vm372_vm0, %v367_v14 }
  0x2a   : > { %p979_p12 = pnand %p978_p11, %p1121_p5  ;;  %p986_p2 = por %p985_p1, %p984_p0 }
  0x2c   : > { %890 = vmatpush3.xpose.msk.msra.mxu0 %vm372_vm0, %v351_v15  ;;  %v735_v15 = vunpack.c.0.s8 %v734_v12  ;;  %p980_p13 = pneg %p979_p12 }
  0x2d   : > { %891 = vmatprep.subr.msk.mxu0 %vm372_vm0, %v366_v16 }
  0x2e   : > { %p987_p3 = pnand %p986_p2, %p980_p13 }
  0x30   : > { %892 = vmatpush3.xpose.msk.msra.mxu0 %vm372_vm0, %v350_v17 }
  0x31   : > { %893 = vmatprep.subr.msk.mxu0 %vm372_vm0, %v365_v18 }
  0x34   : > { %894 = vmatpush3.xpose.msk.msra.mxu0 %vm372_vm0, %v349_v19 }
  0x35   : > { %895 = vmatprep.subr.msk.mxu0 %vm372_vm0, %v364_v20 }
  0x38   : > { %896 = vmatpush3.xpose.msk.msra.mxu0 %vm372_vm0, %v348_v21  ;;  %v738_v21 = vsub.s32 %v735_v15, %v337_v10 }
  0x39   : > { %897 = vmatprep.subr.msk.mxu0 %vm372_vm0, %v363_v22 }
  0x3c   : > { %898 = vmatpush3.xpose.msk.msra.mxu0 %vm372_vm0, %v347_v23 }
  0x3d   : > { %899 = vmatprep.subr.msk.mxu0 %vm372_vm0, %v362_v24 }
  0x40   : > { %900 = vmatpush3.xpose.msk.msra.mxu0 %vm372_vm0, %v346_v25 }
  0x41   : > { %901 = vmatprep.subr.msk.mxu0 %vm372_vm0, %v361_v26 }
  0x44   : > { %902 = vmatpush3.xpose.msk.msra.mxu0 %vm372_vm0, %v345_v27 }
  0x45   : > { %903 = vmatprep.subr.msk.mxu0 %vm372_vm0, %v360_v28 }
  0x48   : > { %904 = vmatpush3.xpose.msk.msra.mxu0 %vm372_vm0, %v344_v29 }
  0x49   : > { %905 = vmatprep.subr.msk.mxu0 %vm372_vm0, %v359_v30 }
  0x4c   : > { %906 = vmatpush3.xpose.msk.msra.mxu0 %vm372_vm0, %v343_v31 }
  0x4d   : > { %907 = vmatprep.subr.msk.mxu0 %vm372_vm0, %v358_v32 }
  0x50   : > { %908 = vmatpush3.xpose.msk.msra.mxu0 %vm372_vm0, %v342_v33 }
  0x51   : > { %909 = vmatprep.subr.msk.mxu0 %vm372_vm0, %v357_v34 }
  0x54   : > { %910 = vmatpush3.xpose.msk.msra.mxu0 %vm372_vm0, %v341_v35 }
  0x55   : > { %911 = vmatprep.subr.msk.mxu0 %vm372_vm0, %v356_v36 }
  0x58   : > { %912 = vmatpush3.xpose.msk.msra.mxu0 %vm372_vm0, %v340_v37 }
  0x5b   : > { %914 = vmatmul.mubr.msk.f32.vlgmr.msra.gmra.mxu0 %vm372_vm0, %v1136_v1 }
  0x5c   : > { %915 = vmatprep.mubr.msk.f32.mxu0 %vm372_vm0, %v302_v38 }
  0x5f   : > { %916 = vmatmul.mubr.msk.f32.gmra.mxu0 %vm372_vm0, %v302_v38 }
  0x93   : > { %v316_v42 = vpop.permute.xlu0 %315 }
  0x94   : > { %v328_v58 = vpop.permute.xlu1 %327 }
  0x97   : > { %v311_v46 = vpop.permute.xlu0 %310 }
  0x98   : > { %v323_v62 = vpop.permute.xlu1 %322 }
  0x9b   : > { %v334_v14 = vpop.permute.xlu0 %333 }
  0x9c   : > { %v339_v17 = vrot.slane %v334_v14, %v338_v13 }
 0x11b   : > { %v541_v43 = vpop.f32.mrf.mxu0 }
 0x11c   : > { %v542_v51 = vadd.f32 %v541_v43, %v311_v46 }
 0x11d   : > { %v543_v44 = vpop.f32.mrf.mxu0 }
 0x11e   : > { %v544_v49 = vadd.f32 %v543_v44, %v311_v46 }
 0x11f   : > { %v547_v45 = vpop.f32.mrf.mxu0 }
 0x120   : > { %v548_v47 = vadd.f32 %v547_v45, %v316_v42 }
 0x121   : > { %v549_v48 = vpop.f32.mrf.mxu0 }
 0x122   : > { %v550_v50 = vadd.f32 %v549_v48, %v316_v42 }
 0x124   : > { %961 = vtanh.f32 %v550_v50 }
 0x125   : > { %963 = vtanh.f32 %v548_v47 }
 0x126   : > { %965 = vtanh.f32 %v544_v49 }
 0x127   : > { %967 = vtanh.f32 %v542_v51 }
 0x131   : > { %v962_v52 = vpop.eup %961 }
 0x132   : > { %v964_v53 = vpop.eup %963  ;;  %868 = vmatprep.subr.msk.mxu1 %vm562_vm1, %v962_v52 }
 0x133   : > { %v966_v54 = vpop.eup %965  ;;  %869 = vmatpush1.msk.msra.mxu1 %vm562_vm1, %v964_v53 }
 0x134   : > { %v968_v56 = vpop.eup %967  ;;  %599 = vmatprep.subr.mxu1 %v966_v54 }
 0x135   : > { %600 = vmatpush1.msra.mxu1 %v968_v56 }
 0x136   : > { %870 = vmatmul.mubr.msk.f32.vlgmr.msra.gmra.mxu1 %vm372_vm0, %v303_v55 }
 0x137   : > { %639 = vmatprep.mubr.f32.mxu1 %v1040_v39 }
 0x13a   : > { %871 = vmatmul.mubr.msk.f32.gmra.mxu1 %vm372_vm0, %v304_v57 }
 0x13b   : > { %723 = vmatprep.mubr.f32.mxu1 %v1040_v39 }
 0x1f6   : > { %v635_v59 = vpop.f32.mrf.mxu1 }
 0x1f7   : > { %v636_v3 = vadd.f32 %v635_v59, %v323_v62 }
 0x1f8   : > { %v637_v60 = vpop.f32.mrf.mxu1 }
 0x1f9   : > { %v638_v1 = vadd.f32 %v637_v60, %v323_v62 }
 0x1fa   : > { %v641_v61 = vpop.f32.mrf.mxu1 }
 0x1fb   : > { %v642_v63 = vadd.f32 %v641_v61, %v328_v58 }
 0x1fc   : > { %v643_v0 = vpop.f32.mrf.mxu1 }
 0x1fd   : > { %v644_v2 = vadd.f32 %v643_v0, %v328_v58 }
 0x1ff   : > { %969 = vtanh.f32 %v644_v2 }
 0x200   : > { %971 = vtanh.f32 %v642_v63 }
 0x201   : > { %973 = vtanh.f32 %v638_v1 }
 0x202   : > { %975 = vtanh.f32 %v636_v3 }
 0x20c   : > { %v970_v4 = vpop.eup %969 }
 0x20d   : > { %v972_v5 = vpop.eup %971  ;;  %872 = vmatprep.subr.msk.mxu1 %vm562_vm1, %v970_v4 }
 0x20e   : > { %v974_v6 = vpop.eup %973  ;;  %873 = vmatpush1.msk.msra.mxu1 %vm562_vm1, %v972_v5 }
 0x20f   : > { %v976_v8 = vpop.eup %975  ;;  %689 = vmatprep.subr.mxu1 %v974_v6 }
 0x210   : > { %690 = vmatpush1.msra.mxu1 %v976_v8 }
 0x211   : > { %874 = vmatmul.mubr.msk.f32.vlgmr.msra.gmra.mxu1 %vm372_vm0, %v305_v7 }
 0x2d1   : > { %v725_v16 = vpop.f32.mrf.mxu1 }
 0x2d2   : > { %v726_v19 = vadd.f32 %v725_v16, %v339_v17 }
 0x2d3   : > { %v727_v18 = vpop.f32.mrf.mxu1 }
 0x2d4   : > { %v728_v20 = vadd.f32 %v727_v18, %v339_v17 }
 0x2d6   : > { %v732_v22 = vcombine.low %v726_v19, %v728_v20 }
 0x2d8   : > { %v739_v23 = vrot.slane %v732_v22, %v738_v21 }
 0x2da   : > { %v746_v24 = vrot.slane %v739_v23, %v738_v21 }
 0x2dc   : > { %752 = vst.msk [vmem:[%s286_s25] sm:$0x3] %vm750_vm2, %v746_v24 }
 0x2dd   : > { %990 = shalt.err (!%p987_p3)
}
 0x2de   : > { %s991_s20 = scalar_lea.hbm %s766_s10, 32  ;;  %s995_s22 = scalar_lea.hbm %s1287_s7, 64 }
 0x2df   : > { %p992_p4 = scmp.ne.s32.totalorder %s766_s10, %s991_s20  ;;  %p996_p9 = scmp.lt.s32.totalorder %s766_s10, %s1287_s7 }
 0x2e0   : > { %p997_p10 = scmp.lt.s32.totalorder %s995_s22, %s991_s20 }
 0x2e1   : > { %p993_p7 = pnand %p992_p4, %p1121_p5 }
 0x2e2   : > { %p998_p11 = por %p997_p10, %p996_p9 }
 0x2e3   : > { %p994_p8 = pneg %p993_p7 }
 0x2e5   : > { %p999_p12 = pnand %p998_p11, %p994_p8 }
 0x2e7   : > { %1002 = shalt.err (!%p999_p12)
}
 0x2e8   : > { %917 = dma.vmem_to_hbm [thread:$0]  (%p1121_p5), %s769_s6, 32, %s766_s10, %s754_s15  }
 0x2e9 PF: > { %p923_p13 = scmp.ge.s32.totalorder %s1037_s29, 2  ;;  %s780_s25 = sand.u32 1, %s1025_s26  }
 0x2ea   : > { %s781_s30 = scalar_lea.sflag [#allocation4], %s780_s25 }
 0x2eb   : > { %p920_p0 = pnand %p923_p13, %p1125_p6 }
 0x2ed   : > { %p921_p1 = pneg %p920_p0 }
 0x2ef   : > { %1020 = dma.done.wait (%p921_p1), %s781_s30, 32  }
 0x2f0   : > { %1022 = vsyncadd (%p921_p1), %s781_s30, 4294967264  ;;  %p19_p2 = scmp.ge.s32.totalorder %s1109_s8, 4   ;;  %s1290_s26 = smov %s1029_s27 }
 0x2f1   : > { %s1291_s27 = smov %s1033_s28  ;;  %s1292_s28 = smov %s1119_s11 }
 0x2f2   : > { %s1293_s29 = smov %s1109_s8  ;;  %21 = sbr.rel (!%p19_p2) target bundleno = 6 (0x6), region = 83 }
 0x2f7   :  { %786 = vsyncpa [#allocation4], 1 }
 0x2f8   :  { %788 = vsyncpa [#allocation4 + $0x1], 1 }

</bundles_post_ra>
